<compile_context>
chip_gen: v7x
topology: tpu7x:2x2x1
jax: 0.10.0
libtpu: 0.0.40
codegen_flags: <defaults>
</compile_context>

<pallas_src>
import jax
import jax.numpy as jnp
from jax.experimental import pallas as pl
from jax.experimental.pallas import tpu as pltpu

_INV_SQRT2 = 0.7071067811865476


def _mlp_kernel(x_ref, wfc_ref, wproj_ref, o_ref, acc_ref):
    # grid = (M // tm, H // th); axis 1 (hidden blocks) is the reduction axis.
    # x_ref:     (tm, C)   row tile of the input (resident across axis 1)
    # wfc_ref:   (C, th)   column block of fc weight (pre-transposed)
    # wproj_ref: (th, C)   row block of proj weight (pre-transposed)
    # o_ref:     (tm, C)   output tile (written only on the last hidden block)
    # acc_ref:   (tm, C)   f32 accumulator scratch
    hb = pl.program_id(1)

    @pl.when(hb == 0)
    def _():
        acc_ref[...] = jnp.zeros_like(acc_ref)

    h = jnp.dot(x_ref[...], wfc_ref[...], preferred_element_type=jnp.float32)
    # exact (erf-based) GELU, matching torch F.gelu(approximate='none')
    h = 0.5 * h * (1.0 + jax.lax.erf(h * _INV_SQRT2))
    acc_ref[...] += jnp.dot(
        h.astype(wproj_ref.dtype), wproj_ref[...],
        preferred_element_type=jnp.float32,
    )

    @pl.when(hb == pl.num_programs(1) - 1)
    def _():
        o_ref[...] = acc_ref[...].astype(o_ref.dtype)


@jax.jit
def mlp_forward(x, w_fc_t, w_proj_t):
    """GPT-2 MLP forward: gelu(x @ w_fc_t) @ w_proj_t.

    x:        (B, T, C)
    w_fc_t:   (C, 4C)  == torch c_fc.weight.T   (transposed once at init)
    w_proj_t: (4C, C)  == torch c_proj.weight.T (transposed once at init)
    """
    B, T, C = x.shape
    H = w_fc_t.shape[1]
    M = B * T
    x2d = x.reshape(M, C)

    # Row tile: 256 rows fills the 256x256 MXU on v6e/v7x (and is a multiple of
    # 128 for v5e); full-extent block for tiny inputs (always legal).
    tm = 256 if M >= 256 else M
    # Hidden tile: multiple of 256; bounds VMEM use independent of model width.
    th = 512 if H >= 512 else H

    grid = (pl.cdiv(M, tm), pl.cdiv(H, th))

    itemsize = jnp.dtype(x.dtype).itemsize
    cost = pl.CostEstimate(
        flops=2 * M * C * H * 2,              # two matmuls
        transcendentals=M * H,                # erf per hidden activation
        bytes_accessed=int(
            (x2d.size + w_fc_t.size + w_proj_t.size + M * C) * itemsize
        ),
    )

    out2d = pl.pallas_call(
        _mlp_kernel,
        out_shape=jax.ShapeDtypeStruct((M, C), x.dtype),
        grid_spec=pltpu.PrefetchScalarGridSpec(
            num_scalar_prefetch=0,
            grid=grid,
            in_specs=[
                pl.BlockSpec((tm, C), lambda i, j: (i, 0)),   # x row tile
                pl.BlockSpec((C, th), lambda i, j: (0, j)),   # fc weight block
                pl.BlockSpec((th, C), lambda i, j: (j, 0)),   # proj weight block
            ],
            out_specs=pl.BlockSpec((tm, C), lambda i, j: (i, 0)),
            scratch_shapes=[pltpu.VMEM((tm, C), jnp.float32)],
        ),
        compiler_params=pltpu.CompilerParams(
            dimension_semantics=("parallel", "arbitrary"),
            vmem_limit_bytes=48 * 1024 * 1024,
        ),
        cost_estimate=cost,
    )(x2d, w_fc_t, w_proj_t)
    return out2d.reshape(B, T, C)


def _reference(x, w_fc, w_proj):
    h = jnp.einsum("btc,hc->bth", x, w_fc)
    h = jax.nn.gelu(h, approximate=False)
    return jnp.einsum("bth,ch->btc", h, w_proj)


if __name__ == "__main__":
    # Small GPT-2-like config: n_embd=32 -> hidden=128
    B, T, C = 2, 8, 32
    H = 4 * C

    key = jax.random.PRNGKey(0)
    kx, kfc, kproj = jax.random.split(key, 3)

    x = jax.random.normal(kx, (B, T, C), dtype=jnp.float32)
    # torch nn.Linear layout: weight is (out_features, in_features)
    w_fc = jax.random.normal(kfc, (H, C), dtype=jnp.float32) * 0.02
    w_proj = jax.random.normal(kproj, (C, H), dtype=jnp.float32) * 0.02

    # Transpose ONCE at init (outside the jitted forward) so every forward call
    # does plain row-major matmuls with no per-call HBM weight transpose.
    w_fc_t = jnp.asarray(w_fc.T)        # (C, 4C)
    w_proj_t = jnp.asarray(w_proj.T)    # (4C, C)

    y = mlp_forward(x, w_fc_t, w_proj_t)
    y = jax.block_until_ready(y)

    y_ref = _reference(x, w_fc, w_proj)
    assert y.shape == (B, T, C)
    assert jnp.allclose(y, y_ref, atol=1e-5, rtol=1e-5), "mismatch vs reference"

    print("KERNEL_OK")
</pallas_src>

<mosaic_0001>
module attributes {stable_mosaic.version = 11 : i64} {
  func.func @_mlp_kernel(%arg0: i32, %arg1: i32, %arg2: memref<16x32xf32, #tpu.memory_space<vmem>>, %arg3: memref<32x128xf32, #tpu.memory_space<vmem>>, %arg4: memref<128x32xf32, #tpu.memory_space<vmem>>, %arg5: memref<16x32xf32, #tpu.memory_space<vmem>>, %arg6: memref<16x32xf32, #tpu.memory_space<vmem>>) attributes {dimension_semantics = [#tpu.dimension_semantics<parallel>, #tpu.dimension_semantics<arbitrary>], iteration_bounds = array<i64: 1, 1>, scalar_prefetch = 0 : i64, scratch_operands = 1 : i64, tpu.core_type = #tpu.core_type<tc>, window_params = [{transform_indices = @transform_0, window_bounds = array<i64: 16, 32>}, {transform_indices = @transform_1, window_bounds = array<i64: 32, 128>}, {transform_indices = @transform_2, window_bounds = array<i64: 128, 32>}, {transform_indices = @transform_3, window_bounds = array<i64: 16, 32>}]} {
    %c0_i32 = arith.constant 0 : i32
    %0 = arith.cmpi eq, %arg1, %c0_i32 : i32
    %1 = arith.extui %0 : i1 to i32
    %c0_i32_0 = arith.constant 0 : i32
    %2 = arith.cmpi ne, %1, %c0_i32_0 : i32
    scf.if %2 {
      %cst_16 = arith.constant 0.000000e+00 : f32
      %22 = vector.broadcast %cst_16 : f32 to vector<16x32xf32>
      %c0_17 = arith.constant 0 : index
      %c0_18 = arith.constant 0 : index
      %23 = vector.load %arg6[%c0_17, %c0_18] : memref<16x32xf32, #tpu.memory_space<vmem>>, vector<16x32xf32>
      tpu.vector_store %arg6[%c0_17, %c0_18], %22 {strides = array<i32>} : memref<16x32xf32, #tpu.memory_space<vmem>>, vector<16x32xf32>,
    } else {
    }
    %c0 = arith.constant 0 : index
    %c0_1 = arith.constant 0 : index
    %3 = vector.load %arg2[%c0, %c0_1] : memref<16x32xf32, #tpu.memory_space<vmem>>, vector<16x32xf32>
    %c0_2 = arith.constant 0 : index
    %c0_3 = arith.constant 0 : index
    %4 = vector.load %arg3[%c0_2, %c0_3] : memref<32x128xf32, #tpu.memory_space<vmem>>, vector<32x128xf32>
    %cst = arith.constant dense<0.000000e+00> : vector<16x128xf32>
    %5 = tpu.matmul %3, %4, %cst {dimension_numbers = #tpu.dot_dimension_numbers<[1], [0], [0], [1], [0, 0, 1, 1], [], []>} : vector<16x32xf32>, vector<32x128xf32>, vector<16x128xf32> -> vector<16x128xf32>
    %cst_4 = arith.constant 5.000000e-01 : f32
    %6 = vector.broadcast %cst_4 : f32 to vector<16x128xf32>
    %7 = arith.mulf %6, %5 : vector<16x128xf32>
    %cst_5 = arith.constant 0.707106769 : f32
    %8 = vector.broadcast %cst_5 : f32 to vector<16x128xf32>
    %9 = arith.mulf %5, %8 : vector<16x128xf32>
    %10 = math.erf %9 : vector<16x128xf32>
    %cst_6 = arith.constant 1.000000e+00 : f32
    %11 = vector.broadcast %cst_6 : f32 to vector<16x128xf32>
    %12 = arith.addf %11, %10 : vector<16x128xf32>
    %13 = arith.mulf %7, %12 : vector<16x128xf32>
    %c0_7 = arith.constant 0 : index
    %c0_8 = arith.constant 0 : index
    %14 = vector.load %arg6[%c0_7, %c0_8] : memref<16x32xf32, #tpu.memory_space<vmem>>, vector<16x32xf32>
    %c0_9 = arith.constant 0 : index
    %c0_10 = arith.constant 0 : index
    %15 = vector.load %arg4[%c0_9, %c0_10] : memref<128x32xf32, #tpu.memory_space<vmem>>, vector<128x32xf32>
    %cst_11 = arith.constant dense<0.000000e+00> : vector<16x32xf32>
    %16 = tpu.matmul %13, %15, %cst_11 {dimension_numbers = #tpu.dot_dimension_numbers<[1], [0], [0], [1], [0, 0, 1, 1], [], []>} : vector<16x128xf32>, vector<128x32xf32>, vector<16x32xf32> -> vector<16x32xf32>
    %17 = arith.addf %14, %16 : vector<16x32xf32>
    %c0_12 = arith.constant 0 : index
    %c0_13 = arith.constant 0 : index
    %18 = vector.load %arg6[%c0_12, %c0_13] : memref<16x32xf32, #tpu.memory_space<vmem>>, vector<16x32xf32>
    tpu.vector_store %arg6[%c0_12, %c0_13], %17 {strides = array<i32>} : memref<16x32xf32, #tpu.memory_space<vmem>>, vector<16x32xf32>,
    %c0_i32_14 = arith.constant 0 : i32
    %19 = arith.cmpi eq, %arg1, %c0_i32_14 : i32
    %20 = arith.extui %19 : i1 to i32
    %c0_i32_15 = arith.constant 0 : i32
    %21 = arith.cmpi ne, %20, %c0_i32_15 : i32
    scf.if %21 {
      %c0_16 = arith.constant 0 : index
      %c0_17 = arith.constant 0 : index
      %22 = vector.load %arg6[%c0_16, %c0_17] : memref<16x32xf32, #tpu.memory_space<vmem>>, vector<16x32xf32>
      %c0_18 = arith.constant 0 : index
      %c0_19 = arith.constant 0 : index
      %23 = vector.load %arg5[%c0_18, %c0_19] : memref<16x32xf32, #tpu.memory_space<vmem>>, vector<16x32xf32>
      tpu.vector_store %arg5[%c0_18, %c0_19], %22 {strides = array<i32>} : memref<16x32xf32, #tpu.memory_space<vmem>>, vector<16x32xf32>,
    } else {
    }
    return
  }
  func.func @transform_0(%arg0: i32, %arg1: i32) -> (i32, i32) {
    %c0_i32 = arith.constant 0 : i32
    %c0_i32_0 = arith.constant 0 : i32
    return %arg0, %c0_i32 : i32, i32
  }
  func.func @transform_1(%arg0: i32, %arg1: i32) -> (i32, i32) {
    %c0_i32 = arith.constant 0 : i32
    %c0_i32_0 = arith.constant 0 : i32
    return %c0_i32, %arg1 : i32, i32
  }
  func.func @transform_2(%arg0: i32, %arg1: i32) -> (i32, i32) {
    %c0_i32 = arith.constant 0 : i32
    %c0_i32_0 = arith.constant 0 : i32
    return %arg1, %c0_i32 : i32, i32
  }
  func.func @transform_3(%arg0: i32, %arg1: i32) -> (i32, i32) {
    %c0_i32 = arith.constant 0 : i32
    %c0_i32_0 = arith.constant 0 : i32
    return %arg0, %c0_i32 : i32, i32
  }
}

</mosaic_0001>

<bundles_post_ra>
// kernel: mlp_forward.1
= control target key start
LH: loop header
LB: loop body
LE: loop exit
PB: predicated region body
PF: predicated region fallthrough
CT: control target
= control target key end

     0   :  { %vm19_vm0 = vcmask 261120   ;;  %s494_s0 = inlined_call_operand.vmem [shape: f32[16,32], index: 0, kind: input, shape index: {}]   ;;  %s495_s1 = inlined_call_operand.vmem [shape: f32[32,128], index: 1, kind: input, shape index: {}]   ;;  %s496_s2 = inlined_call_operand.vmem [shape: f32[128,32], index: 2, kind: input, shape index: {}]   ;;  %s497_s3 = inlined_call_operand.hbm [shape: f32[16,32], index: 3, kind: output, shape index: {}]  }
   0x1   :  { %v24_v0 = vld [vmem:[%s495_s1] sm:$0xff]  ;;  %v25_v1 = vld [vmem:[%s495_s1 + $0x8] sm:$0xff]  ;;  %v26_v2 = vld [vmem:[%s495_s1 + $0x10] sm:$0xff] }
   0x2   :  { %v312_v3 = vpack.c.bf16 %v25_v1, %v24_v0  ;;  %v27_v4 = vld [vmem:[%s495_s1 + $0x18] sm:$0xff]  ;;  %v22_v5 = vld [vmem:[%s494_s0] sm:$0xff]  ;;  %v123_v8 = vld [vmem:[%s496_s2 + $0x8] sm:$0xff] }
   0x3   :  { %v316_v6 = vpack.c.bf16 %v27_v4, %v26_v2  ;;  %274 = vmatprep.mubr.msk.f32.mxu0 %vm19_vm0, %v22_v5  ;;  %v122_v7 = vld [vmem:[%s496_s2] sm:$0xff]  ;;  %v124_v9 = vld [vmem:[%s496_s2 + $0x10] sm:$0xff]  ;;  %v125_v11 = vld [vmem:[%s496_s2 + $0x18] sm:$0xff] }
   0x4   :  { %313 = vmatprep.subr.bf16.mxu0 %v312_v3  ;;  %v320_v10 = vpack.c.bf16 %v123_v8, %v122_v7  ;;  %v324_v12 = vpack.c.bf16 %v125_v11, %v124_v9  ;;  %v126_v13 = vld [vmem:[%s496_s2 + $0x20] sm:$0xff]  ;;  %v127_v14 = vld [vmem:[%s496_s2 + $0x28] sm:$0xff] }
   0x5   :  { %315 = vmatpush3.bf16.msra.mxu0 %v312_v3 }
   0x6   :  { %8 = vsyncpa [#allocation4], 0  ;;  %317 = vmatprep.subr.bf16.mxu0 %v316_v6  ;;  %321 = vmatprep.subr.bf16.mxu1 %v320_v10  ;;  %v328_v15 = vpack.c.bf16 %v127_v14, %v126_v13  ;;  %v23_v16 = vld [vmem:[%s494_s0 + $0x8] sm:$0xff]  ;;  %v128_v17 = vld [vmem:[%s496_s2 + $0x30] sm:$0xff]  ;;  %v384_v32 = vmov 0.0  }
   0x7   :  { %323 = vmatpush3.bf16.msra.mxu1 %v320_v10  ;;  %v129_v18 = vld [vmem:[%s496_s2 + $0x38] sm:$0xff]  ;;  %v130_v20 = vld [vmem:[%s496_s2 + $0x40] sm:$0xff]  ;;  %v131_v21 = vld [vmem:[%s496_s2 + $0x48] sm:$0xff]  ;;  %21 = vst.msk [vmem:[#allocation2 + $0x8] sm:$0xff] %vm19_vm0, %v384_v32 }
   0x8   :  { %325 = vmatprep.subr.bf16.mxu1 %v324_v12  ;;  %v332_v19 = vpack.c.bf16 %v129_v18, %v128_v17  ;;  %v336_v22 = vpack.c.bf16 %v131_v21, %v130_v20  ;;  %v132_v23 = vld [vmem:[%s496_s2 + $0x50] sm:$0xff]  ;;  %v133_v24 = vld [vmem:[%s496_s2 + $0x58] sm:$0xff]  ;;  %v134_v26 = vld [vmem:[%s496_s2 + $0x60] sm:$0xff]  ;;  %20 = vst.msk [vmem:[#allocation2] sm:$0xff] %vm19_vm0, %v384_v32 }
   0x9   :  { %319 = vmatpush3.bf16.msra.mxu0 %v316_v6  ;;  %v340_v25 = vpack.c.bf16 %v133_v24, %v132_v23  ;;  %v135_v27 = vld [vmem:[%s496_s2 + $0x68] sm:$0xff]  ;;  %v136_v29 = vld [vmem:[%s496_s2 + $0x70] sm:$0xff]  ;;  %v137_v30 = vld [vmem:[%s496_s2 + $0x78] sm:$0xff]  ;;  %s385_s2 = smov [#allocation3]  }
   0xa   :  { %v344_v28 = vpack.c.bf16 %v135_v27, %v134_v26  ;;  %v348_v31 = vpack.c.bf16 %v137_v30, %v136_v29  ;;  %s229_s27 = sshll.u32 %s385_s2, 4  ;;  %s230_s27 = int_to_ptr.vmem [resolvable:$true] %s229_s27 }
   0xb   :  { %327 = vmatpush3.bf16.msra.mxu1 %v324_v12  ;;  %s360_s1 = scalar_lea.vmem %s230_s27, 256  ;;  %p365_p1 = scmp.lt.s32.totalorder %s230_s27, %s230_s27 }
   0xc   :  { %275 = vmatmul.mubr.msk.f32.vlgmr.msra.gmra.mrb[0].mxu0 %vm19_vm0, %v23_v16  ;;  %329 = vmatprep.subr.bf16.mxu1 %v328_v15  ;;  %p361_p0 = scmp.ne.s32.totalorder %s230_s27, %s360_s1  ;;  %p366_p2 = scmp.lt.s32.totalorder %s360_s1, %s360_s1 }
   0xe   :  { %v121_v45 = vld [vmem:[#allocation2 + $0x8] sm:$0xff]  ;;  %p367_p3 = por %p366_p2, %p365_p1 }
   0xf   :  { %331 = vmatpush3.bf16.msra.mxu1 %v328_v15  ;;  %v120_v46 = vld [vmem:[#allocation2] sm:$0xff] }
  0x10   :  { %333 = vmatprep.subr.bf16.mxu1 %v332_v19  ;;  %p368_p4 = pnand %p367_p3, %p361_p0 }
  0x13   :  { %335 = vmatpush3.bf16.msra.mxu1 %v332_v19 }
  0x14   :  { %337 = vmatprep.subr.bf16.mxu1 %v336_v22 }
  0x17   :  { %339 = vmatpush3.bf16.msra.mxu1 %v336_v22 }
  0x18   :  { %341 = vmatprep.subr.bf16.mxu1 %v340_v25 }
  0x1b   :  { %343 = vmatpush3.bf16.msra.mxu1 %v340_v25 }
  0x1c   :  { %345 = vmatprep.subr.bf16.mxu1 %v344_v28 }
  0x1f   :  { %347 = vmatpush3.bf16.msra.mxu1 %v344_v28 }
  0x20   :  { %349 = vmatprep.subr.bf16.mxu1 %v348_v31 }
  0x23   :  { %351 = vmatpush3.bf16.msra.mxu1 %v348_v31 }
  0xdf   :  { %v276_v33 = vpop.f32.mrb[0].mxu0 }
  0xe0   :  { %v113_v34 = vmul.f32 0.70710677, %v276_v33  ;;  %v101_v35 = vpop.f32.mrb[1].mxu0  ;;  %v111_v42 = vmul.f32 0.5, %v276_v33 }
  0xe1   :  { %v112_v36 = vmul.f32 0.70710677, %v101_v35  ;;  %v110_v40 = vmul.f32 0.5, %v101_v35 }
  0xe2   :  { %356 = verf.f32 %v113_v34 }
  0xe3   :  { %358 = verf.f32 %v112_v36 }
  0xec   :  { %v357_v37 = vpop.eup %356 }
  0xed   :  { %v359_v38 = vpop.eup %358  ;;  %v117_v39 = vadd.f32 1.0, %v357_v37 }
  0xee   :  { %v116_v41 = vadd.f32 1.0, %v359_v38 }
  0xef   :  { %v119_v44 = vmul.f32 %v117_v39, %v111_v42 }
  0xf0   :  { %v118_v43 = vmul.f32 %v116_v41, %v110_v40 }
  0xf2   :  { %309 = vmatprep.mubr.f32.mxu1 %v118_v43 }
  0xf3   :  { %310 = vmatmul.mubr.f32.vlgmr.msra.gmra.mrb[0].mxu1 %v119_v44 }
 0x1c6   :  { %v311_v47 = vpop.f32.mrb[0].mxu1 }
 0x1c7   :  { %v214_v48 = vadd.f32 %v311_v47, %v121_v45  ;;  %v204_v49 = vpop.f32.mrb[1].mxu1 }
 0x1c8   :  { %v213_v50 = vadd.f32 %v204_v49, %v120_v46 }
 0x1c9   :  { %216 = vst.msk [vmem:[#allocation2 + $0x8] sm:$0xff] %vm19_vm0, %v214_v48 }
 0x1ca   :  { %215 = vst.msk [vmem:[#allocation2] sm:$0xff] %vm19_vm0, %v213_v50 }
 0x1d0   :  { %v221_v51 = vld [vmem:[#allocation2 + $0x8] sm:$0xff] }
 0x1d1   :  { %v220_v52 = vld [vmem:[#allocation2] sm:$0xff]  ;;  %223 = vst.msk [vmem:[#allocation3 + $0x8] sm:$0xff] %vm19_vm0, %v221_v51 }
 0x1d2   :  { %222 = vst.msk [vmem:[#allocation3] sm:$0xff] %vm19_vm0, %v220_v52 }
 0x1d3   :  { %371 = shalt.err (!%p368_p4)
}
 0x1d4   :  { %s372_s30 = scalar_lea.hbm %s497_s3, 256 }
 0x1d5   :  { %p373_p5 = scmp.ne.s32.totalorder %s497_s3, %s372_s30  ;;  %p376_p6 = scmp.lt.u32.totalorder %s372_s30, %s497_s3 }
 0x1d7   :  { %p378_p7 = pnand %p376_p6, %p373_p5 }
 0x1d9   :  { %381 = shalt.err (!%p378_p7)
}
 0x1da   :  { %s386_s8 = smov 128   ;;  %s387_s9 = smov 8  }
 0x1db   :  { %235 = dma.vmem_to_hbm [thread:$0]  %s230_s27, 256, %s497_s3, [#allocation4], %s386_s8, %s386_s8, %s387_s9  }
 0x1dc   :  { %382 = dma.done.wait [#allocation4], 256  }
 0x1dd   :  { %383 = vsyncadd [#allocation4], 4294967040 }
 0x1de   :  { %239 = vsyncpa [#allocation4], 1 }

</bundles_post_ra>
